<compile_context>
chip_gen: v6e
topology: v6e:2x2x1
jax: 0.10.0
libtpu: 0.0.40
codegen_flags: <defaults>
</compile_context>

<pallas_src>
import math

import jax
import jax.numpy as jnp
from jax.experimental import pallas as pl
from jax.experimental.pallas import tpu as pltpu


def make_positional_encoding_table(d_model: int, max_len: int = 5000,
                                   dtype=jnp.float32) -> jax.Array:
    """[max_len, d_model] sinusoidal table (the `pe` buffer, batch axis squeezed)."""
    position = jnp.arange(max_len, dtype=jnp.float32)[:, None]            # [L, 1]
    div_term = jnp.exp(
        jnp.arange(0, d_model, 2, dtype=jnp.float32)
        * (-math.log(10000.0) / d_model))                                 # [D/2]
    pe = jnp.zeros((max_len, d_model), dtype=jnp.float32)
    pe = pe.at[:, 0::2].set(jnp.sin(position * div_term))
    pe = pe.at[:, 1::2].set(jnp.cos(position * div_term))
    return pe.astype(dtype)


# ---------------------------------------------------------------------------
# Kernels
# ---------------------------------------------------------------------------
def _pe_kernel_factory(mode: str, dropout_p: float):
    """mode: 'eval' | 'train_hw' (TPU HW PRNG) | 'train_bits' (bits passed in)."""
    if mode != "eval":
        # keep iff uniform_u32 >= p * 2^32   (keep prob = 1 - p, quantized to 2^-32)
        threshold = min(int(round(dropout_p * 4294967296.0)), 0xFFFFFFFF)
        scale = 1.0 / (1.0 - dropout_p)

    def _add_pe(x_ref, pe_ref):
        # x_ref: (TS, TB, D); pe_ref: (TS, 1, D) -> broadcast over batch sublanes.
        return x_ref[...] + pe_ref[...].astype(x_ref.dtype)

    def eval_kernel(x_ref, pe_ref, o_ref):
        o_ref[...] = _add_pe(x_ref, pe_ref).astype(o_ref.dtype)

    def train_hw_kernel(seed_ref, x_ref, pe_ref, o_ref):
        y = _add_pe(x_ref, pe_ref)
        # Independent stream per grid tile: pass (seed, tile_id) as two seed
        # words instead of adding consecutive ints (avoids correlated streams).
        tile_id = pl.program_id(0) * pl.num_programs(1) + pl.program_id(1)
        pltpu.prng_seed(seed_ref[0], tile_id)
        bits = pltpu.bitcast(pltpu.prng_random_bits(y.shape), jnp.uint32)
        keep = bits >= jnp.uint32(threshold)
        y = jnp.where(keep, y * jnp.asarray(scale, dtype=y.dtype),
                      jnp.zeros_like(y))
        o_ref[...] = y.astype(o_ref.dtype)

    def train_bits_kernel(x_ref, pe_ref, bits_ref, o_ref):
        y = _add_pe(x_ref, pe_ref)
        keep = bits_ref[...] >= jnp.uint32(threshold)
        y = jnp.where(keep, y * jnp.asarray(scale, dtype=y.dtype),
                      jnp.zeros_like(y))
        o_ref[...] = y.astype(o_ref.dtype)

    return {"eval": eval_kernel,
            "train_hw": train_hw_kernel,
            "train_bits": train_bits_kernel}[mode]


# ---------------------------------------------------------------------------
# Tiling helpers
# ---------------------------------------------------------------------------
def _round_up(x: int, m: int) -> int:
    return ((x + m - 1) // m) * m


def _sublane_pack(itemsize: int) -> int:
    # 8 for f32, 16 for bf16, 32 for int8/fp8.
    return max(8, 32 // max(int(itemsize), 1))


def _vmem_capacity_bytes() -> int:
    try:
        cap = getattr(pltpu.get_tpu_info(), "vmem_capacity_bytes", None)
        if cap:
            return int(cap)
    except Exception:
        pass
    return 64 << 20   # conservative default (v7x per-TC VMEM)


# ---------------------------------------------------------------------------
# Forward
# ---------------------------------------------------------------------------
def positional_encoding_forward(x: jax.Array, pe: jax.Array, *,
                                dropout_p: float = 0.1,
                                training: bool = False,
                                seed: int = 0,
                                rng_key: jax.Array | None = None) -> jax.Array:
    """x: [seq_len, batch, d_model]; pe: [max_len, d_model] (full table)."""
    S, B, D = x.shape
    L = pe.shape[0]
    assert pe.shape[-1] == D and L >= S

    apply_dropout = bool(training) and dropout_p > 0.0
    if apply_dropout and dropout_p >= 1.0:
        return jnp.zeros_like(x)

    on_tpu = jax.default_backend() == "tpu"
    mode = "eval" if not apply_dropout else ("train_hw" if on_tpu else "train_bits")

    # Full pe table, metadata-only reshape; cast to x.dtype happens in-kernel.
    pe3 = pe.reshape(L, 1, D)

    itemsize = jnp.dtype(x.dtype).itemsize
    pe_itemsize = jnp.dtype(pe.dtype).itemsize
    sub = _sublane_pack(itemsize)
    D_pad = _round_up(D, 128)
    cap = _vmem_capacity_bytes()

    # Per-tile VMEM footprint, counting sublane/lane padding, double-buffered
    # I/O tiles, the pe tile, and training-mode temporaries (u32 bits + mask).
    def tile_bytes(ts: int, tb: int) -> int:
        tbp = _round_up(tb, sub)
        x_tile = ts * tbp * D_pad * itemsize
        pe_tile = ts * sub * D_pad * pe_itemsize          # (TS,1,D) pads to sub rows
        bits_in = ts * tbp * D_pad * 4 if mode == "train_bits" else 0
        temp_per_elem = (4 + 4 + itemsize) if apply_dropout else itemsize
        return 2 * (2 * x_tile + pe_tile + bits_in) + temp_per_elem * ts * tbp * D_pad

    # Batch tiling only when a single (TS=8, full-B) slab is already too big.
    TB = B
    if B > sub and tile_bytes(8, B) > cap // 2:
        TB = sub
        for tb in range(_round_up(B, sub), sub - 1, -sub):
            if tb <= B and tile_bytes(8, tb) <= cap // 2:
                TB = tb
                break

    # Sequence tile: ~4 MiB of x per tile (2 MiB when training, since PRNG
    # temporaries compete for VMEM), rounded to a multiple of 8.
    target = (2 << 20) if apply_dropout else (4 << 20)
    tbp = _round_up(TB, sub)
    TS = max(8, (target // max(tbp * D_pad * itemsize, 1)) // 8 * 8)
    TS = min(TS, _round_up(S, 8))
    if S > 8:
        # >=2 sequence tiles so both v7x TensorCores get work (free on v5e/v6e).
        TS = min(TS, max(8, _round_up((S + 1) // 2, 8)))
    while TS > 8 and tile_bytes(TS, TB) > int(0.7 * cap):
        TS = max(8, (TS // 2) // 8 * 8)

    vmem_need = tile_bytes(TS, TB)
    vmem_limit = int(max(min(vmem_need + (4 << 20), int(0.9 * cap)), 16 << 20))
    vmem_limit = max(vmem_limit, vmem_need)

    grid = (pl.cdiv(S, TS), pl.cdiv(B, TB))
    x_spec = pl.BlockSpec((TS, TB, D), lambda i, j: (i, j, 0))
    pe_spec = pl.BlockSpec((TS, 1, D), lambda i, j: (i, 0, 0))
    out_spec = pl.BlockSpec((TS, TB, D), lambda i, j: (i, j, 0))

    kernel = _pe_kernel_factory(mode, dropout_p)

    if mode == "eval":
        in_specs = [x_spec, pe_spec]
        operands = (x, pe3)
    elif mode == "train_hw":
        seed_arr = jnp.array([seed], dtype=jnp.int32)
        in_specs = [pl.BlockSpec(memory_space=pltpu.MemorySpace.SMEM),
                    x_spec, pe_spec]
        operands = (seed_arr, x, pe3)
    else:  # "train_bits": non-TPU fallback (HW PRNG has no lowering there).
        key = rng_key if rng_key is not None else jax.random.PRNGKey(seed)
        bits = jax.random.bits(key, (S, B, D), dtype=jnp.uint32)
        bits_spec = pl.BlockSpec((TS, TB, D), lambda i, j: (i, j, 0))
        in_specs = [x_spec, pe_spec, bits_spec]
        operands = (x, pe3, bits)

    return pl.pallas_call(
        kernel,
        out_shape=jax.ShapeDtypeStruct((S, B, D), x.dtype),
        grid=grid,
        in_specs=in_specs,
        out_specs=out_spec,
        compiler_params=pltpu.CompilerParams(
            dimension_semantics=("parallel", "parallel"),
            vmem_limit_bytes=vmem_limit,
        ),
    )(*operands)


if __name__ == "__main__":
    # Small shapes consistent with the module's forward:
    # x: [seq_len=8, batch=2, d_model=32]
    d_model = 32
    max_len = 64
    seq_len = 8
    batch = 2
    p = 0.1

    key = jax.random.PRNGKey(0)
    x = jax.random.normal(key, (seq_len, batch, d_model), dtype=jnp.float32)
    pe = make_positional_encoding_table(d_model, max_len)

    # --- eval mode (dropout is identity), matches module.eval() exactly ---
    out = positional_encoding_forward(x, pe, dropout_p=p, training=False)
    out = jax.block_until_ready(out)

    ref = x + pe[:seq_len][:, None, :]
    assert out.shape == x.shape and out.dtype == x.dtype
    assert jnp.allclose(out, ref, atol=1e-6, rtol=1e-6)

    # --- training mode (inverted dropout) ---
    # TODO(synk): training-mode dropout cannot bit-match torch's RNG stream;
    # we only verify inverted-dropout semantics (values are 0 or ref/(1-p)).
    out_tr = positional_encoding_forward(x, pe, dropout_p=p, training=True,
                                         seed=123)
    out_tr = jax.block_until_ready(out_tr)
    expected = ref / (1.0 - p)
    ok = jnp.logical_or(jnp.isclose(out_tr, 0.0, atol=1e-6),
                        jnp.isclose(out_tr, expected, atol=1e-5, rtol=1e-5))
    assert out_tr.shape == x.shape and bool(jnp.all(ok))

    print("KERNEL_OK")
</pallas_src>

<mosaic_0001>
module attributes {stable_mosaic.version = 11 : i64} {
  func.func @eval_kernel(%arg0: i32, %arg1: i32, %arg2: memref<8x2x32xf32, #tpu.memory_space<vmem>>, %arg3: memref<8x1x32xf32, #tpu.memory_space<vmem>>, %arg4: memref<8x2x32xf32, #tpu.memory_space<vmem>>) attributes {dimension_semantics = [#tpu.dimension_semantics<parallel>, #tpu.dimension_semantics<parallel>], iteration_bounds = array<i64: 1, 1>, scalar_prefetch = 0 : i64, scratch_operands = 0 : i64, tpu.core_type = #tpu.core_type<tc>, window_params = [{transform_indices = @transform_0, window_bounds = array<i64: 8, 2, 32>}, {transform_indices = @transform_1, window_bounds = array<i64: 8, 1, 32>}, {transform_indices = @transform_2, window_bounds = array<i64: 8, 2, 32>}]} {
    %c0 = arith.constant 0 : index
    %c0_0 = arith.constant 0 : index
    %c0_1 = arith.constant 0 : index
    %0 = vector.load %arg2[%c0, %c0_0, %c0_1] : memref<8x2x32xf32, #tpu.memory_space<vmem>>, vector<8x2x32xf32>
    %c0_2 = arith.constant 0 : index
    %c0_3 = arith.constant 0 : index
    %c0_4 = arith.constant 0 : index
    %1 = vector.load %arg3[%c0_2, %c0_3, %c0_4] : memref<8x1x32xf32, #tpu.memory_space<vmem>>, vector<8x1x32xf32>
    %2 = vector.broadcast %1 : vector<8x1x32xf32> to vector<8x2x32xf32>
    %3 = arith.addf %0, %2 : vector<8x2x32xf32>
    %c0_5 = arith.constant 0 : index
    %c0_6 = arith.constant 0 : index
    %c0_7 = arith.constant 0 : index
    %4 = vector.load %arg4[%c0_5, %c0_6, %c0_7] : memref<8x2x32xf32, #tpu.memory_space<vmem>>, vector<8x2x32xf32>
    tpu.vector_store %arg4[%c0_5, %c0_6, %c0_7], %3 {strides = array<i32>} : memref<8x2x32xf32, #tpu.memory_space<vmem>>, vector<8x2x32xf32>,
    return
  }
  func.func @transform_0(%arg0: i32, %arg1: i32) -> (i32, i32, i32) {
    %c0_i32 = arith.constant 0 : i32
    %c0_i32_0 = arith.constant 0 : i32
    return %arg0, %arg1, %c0_i32 : i32, i32, i32
  }
  func.func @transform_1(%arg0: i32, %arg1: i32) -> (i32, i32, i32) {
    %c0_i32 = arith.constant 0 : i32
    %c0_i32_0 = arith.constant 0 : i32
    %c0_i32_1 = arith.constant 0 : i32
    return %arg0, %c0_i32, %c0_i32_0 : i32, i32, i32
  }
  func.func @transform_2(%arg0: i32, %arg1: i32) -> (i32, i32, i32) {
    %c0_i32 = arith.constant 0 : i32
    %c0_i32_0 = arith.constant 0 : i32
    return %arg0, %arg1, %c0_i32 : i32, i32, i32
  }
}

</mosaic_0001>

<bundles_post_ra>
// kernel: tpu_custom_call.1
= control target key start
LH: loop header
LB: loop body
LE: loop exit
PB: predicated region body
PF: predicated region fallthrough
CT: control target
= control target key end

     0   :  { %vm84_vm0 = vcmask 254976   ;;  %s219_s0 = inlined_call_operand.vmem [shape: f32[8,2,32], index: 0, kind: input, shape index: {}]   ;;  %s220_s1 = inlined_call_operand.vmem [shape: f32[64,1,32], index: 1, kind: input, shape index: {}]   ;;  %s221_s2 = inlined_call_operand.hbm [shape: f32[8,2,32], index: 2, kind: output, shape index: {}]  }
   0x1   :  { %v12_v0 = vld [vmem:[%s219_s0] sm:$0x3]  ;;  %v13_v3 = vld [vmem:[%s219_s0 + $0x2] sm:$0x3]  ;;  %v14_v5 = vld [vmem:[%s219_s0 + $0x4] sm:$0x3] }
   0x2   :  { %v109_v1 = vld [vmem:[%s220_s1] ss:$0 sm:$0xff]  ;;  %v110_v4 = vld [vmem:[%s220_s1 + $0x1] ss:$0 sm:$0xff]  ;;  %v111_v7 = vld [vmem:[%s220_s1 + $0x2] ss:$0 sm:$0xff] }
   0x3   :  { %v76_v2 = vadd.f32 %v109_v1, %v12_v0  ;;  %v77_v6 = vadd.f32 %v110_v4, %v13_v3  ;;  %v15_v8 = vld [vmem:[%s219_s0 + $0x6] sm:$0x3]  ;;  %v112_v9 = vld [vmem:[%s220_s1 + $0x3] ss:$0 sm:$0xff]  ;;  %v78_v10 = vadd.f32 %v111_v7, %v14_v5  ;;  %v16_v12 = vld [vmem:[%s219_s0 + $0x8] sm:$0x3] }
   0x4   :  { %v79_v11 = vadd.f32 %v112_v9, %v15_v8  ;;  %v113_v13 = vld [vmem:[%s220_s1 + $0x4] ss:$0 sm:$0xff]  ;;  %v17_v14 = vld [vmem:[%s219_s0 + $0xa] sm:$0x3]  ;;  %v114_v16 = vld [vmem:[%s220_s1 + $0x5] ss:$0 sm:$0xff] }
   0x5   :  { %85 = vst.msk [vmem:[#allocation2] sm:$0x3] %vm84_vm0, %v76_v2  ;;  %86 = vst.msk [vmem:[#allocation2 + $0x2] sm:$0x3] %vm84_vm0, %v77_v6  ;;  %v80_v15 = vadd.f32 %v113_v13, %v16_v12  ;;  %v18_v17 = vld [vmem:[%s219_s0 + $0xc] sm:$0x3]  ;;  %v81_v19 = vadd.f32 %v114_v16, %v17_v14 }
   0x6   :  { %v115_v18 = vld [vmem:[%s220_s1 + $0x6] ss:$0 sm:$0xff]  ;;  %87 = vst.msk [vmem:[#allocation2 + $0x4] sm:$0x3] %vm84_vm0, %v78_v10  ;;  %88 = vst.msk [vmem:[#allocation2 + $0x6] sm:$0x3] %vm84_vm0, %v79_v11 }
   0x7   :  { %v82_v20 = vadd.f32 %v115_v18, %v18_v17  ;;  %v19_v21 = vld [vmem:[%s219_s0 + $0xe] sm:$0x3]  ;;  %v116_v22 = vld [vmem:[%s220_s1 + $0x7] ss:$0 sm:$0xff] }
   0x8   :  { %7 = vsyncpa [#allocation3], 0  ;;  %89 = vst.msk [vmem:[#allocation2 + $0x8] sm:$0x3] %vm84_vm0, %v80_v15  ;;  %v83_v23 = vadd.f32 %v116_v22, %v19_v21  ;;  %s142_s13 = smov [#allocation2]  }
   0x9   :  { %s98_s14 = sshll.u32 %s142_s13, 4  ;;  %90 = vst.msk [vmem:[#allocation2 + $0xa] sm:$0x3] %vm84_vm0, %v81_v19  ;;  %91 = vst.msk [vmem:[#allocation2 + $0xc] sm:$0x3] %vm84_vm0, %v82_v20  ;;  %s99_s14 = int_to_ptr.vmem [resolvable:$true] %s98_s14 }
   0xa   :  { %92 = vst.msk [vmem:[#allocation2 + $0xe] sm:$0x3] %vm84_vm0, %v83_v23  ;;  %s120_s15 = scalar_lea.vmem %s99_s14, 256  ;;  %p125_p1 = scmp.lt.s32.totalorder %s99_s14, %s99_s14 }
   0xb   :  { %p121_p0 = scmp.ne.s32.totalorder %s99_s14, %s120_s15  ;;  %p126_p2 = scmp.lt.s32.totalorder %s120_s15, %s120_s15 }
   0xd   :  { %p127_p3 = por %p126_p2, %p125_p1 }
   0xf   :  { %p128_p4 = pnand %p127_p3, %p121_p0 }
  0x11   :  { %131 = shalt.err (!%p128_p4)
}
  0x12   :  { %s143_s0 = smov 32   ;;  %s144_s1 = smov 2  }
  0x13   :  { %104 = dma.vmem_to_hbm [thread:$0]  %s99_s14, 256, %s221_s2, [#allocation3], %s143_s0, %s143_s0, %s144_s1  }
  0x14   :  { %140 = dma.done.wait [#allocation3], 256  }
  0x15   :  { %141 = vsyncadd [#allocation3], 4294967040 }
  0x16   :  { %108 = vsyncpa [#allocation3], 1 }

</bundles_post_ra>
